<compile_context>
chip_gen: v5e
topology: v5e:2x2
jax: 0.10.0
libtpu: 0.0.40
codegen_flags: <defaults>
</compile_context>

<pallas_src>
import jax
import jax.numpy as jnp
from jax.experimental import pallas as pl
from jax.experimental.pallas import tpu as pltpu


def _round_up(n, m):
    return ((n + m - 1) // m) * m


# ----------------------------- Pallas kernel -------------------------------
def _ct_discriminator_kernel(
    x_ref,     # (TB, IN_DIM)       f32   batch tile (cast to bf16 in VMEM)
    w01_ref,   # (IN_DIM, 64)       bf16  frozen encoder folded into SN Linear 1
    b01_ref,   # (1, 64)            f32
    w2_ref,    # (64, 32)           bf16  SN Linear 2
    b2_ref,    # (1, 32)            f32
    w3_ref,    # (32, END_DIM)      bf16  SN Linear 3
    b3_ref,    # (1, END_DIM)       f32
    o_ref,     # (TB, END_DIM)      f32
):
    # In-kernel bf16 cast: x arrives f32 from HBM, converted once in VMEM.
    x = x_ref[...].astype(jnp.bfloat16)

    # (frozen affine encoder) o SN(Linear(latent, 64)) folded into one matmul, + ReLU.
    h = jnp.dot(x, w01_ref[...], preferred_element_type=jnp.float32) + b01_ref[...]
    h = jnp.maximum(h, 0.0)

    # SN(Linear(64, 32)) + ReLU.
    h = jnp.dot(h.astype(jnp.bfloat16), w2_ref[...],
                preferred_element_type=jnp.float32) + b2_ref[...]
    h = jnp.maximum(h, 0.0)

    # SN(Linear(32, end_dim)). Narrow masked store; HBM bytes, not vst slots,
    # are what matter for this kernel.
    o_ref[...] = (
        jnp.dot(h.astype(jnp.bfloat16), w3_ref[...],
                preferred_element_type=jnp.float32) + b3_ref[...]
    ).astype(o_ref.dtype)


# ------------------------------- wrapper ------------------------------------
def ct_discriminator(x, params, *, tile_b=2048):
    """Fused discriminator forward.

    x: (B, in_dim) float32 (cast to bf16 inside the kernel).
    params: kernel params from make_params() (folded / bf16 weights).
    Returns (B, end_dim) float32.
    """
    B, in_dim = x.shape
    w01, b01 = params["w01"], params["b01"]
    w2, b2 = params["w2"], params["b2"]
    w3, b3 = params["w3"], params["b3"]
    end_dim = int(w3.shape[1])
    assert w01.shape[0] == in_dim

    # Batch tile: multiple of 16 (bf16 sublane packing).
    b16 = _round_up(B, 16)
    tb = min(_round_up(tile_b, 16), b16)
    # If one default tile would swallow a *large* batch, split into two tiles
    # so the "parallel" grid axis can shard across both v7x TensorCores.
    if tb >= b16 and b16 >= 4096:
        tb = _round_up(b16 // 2, 16)

    grid = pl.cdiv(B, tb)   # ragged last tile handled by Pallas edge masking

    def _const_spec(shape):
        return pl.BlockSpec(shape, lambda i: (0, 0))

    # VMEM footprint: double-buffered x/out tiles + intermediates + weights.
    vmem_bytes = 2 * (tb * in_dim * 4)                       # f32 x tiles
    vmem_bytes += 2 * (tb * end_dim * 4)                     # f32 out tiles
    vmem_bytes += 4 * (tb * 64 * 4)                          # in-kernel temporaries
    vmem_bytes += 2 * 2 * int(w01.size + w2.size + w3.size)  # bf16 weights (dbl-buf)
    vmem_bytes += 2 * 4 * int(b01.size + b2.size + b3.size)  # f32 biases
    # Headroom, but stay well under v7x's 64 MiB physical VMEM.
    vmem_limit = int(min(max(2 * vmem_bytes, 16 * 1024 * 1024), 48 * 1024 * 1024))

    flops = 2 * B * (in_dim * 64 + 64 * 32 + 32 * end_dim)
    bytes_accessed = (B * in_dim * 4 + B * end_dim * 4
                      + 2 * int(w01.size + w2.size + w3.size)
                      + 4 * int(b01.size + b2.size + b3.size))

    out = pl.pallas_call(
        _ct_discriminator_kernel,
        out_shape=jax.ShapeDtypeStruct((B, end_dim), jnp.float32),
        grid_spec=pltpu.PrefetchScalarGridSpec(
            num_scalar_prefetch=0,
            grid=(grid,),
            in_specs=[
                pl.BlockSpec((tb, in_dim), lambda i: (i, 0)),   # x tiled over batch
                _const_spec(w01.shape),
                _const_spec(b01.shape),
                _const_spec(w2.shape),
                _const_spec(b2.shape),
                _const_spec(w3.shape),
                _const_spec(b3.shape),
            ],
            out_specs=pl.BlockSpec((tb, end_dim), lambda i: (i, 0)),
        ),
        compiler_params=pltpu.CompilerParams(
            dimension_semantics=("parallel",),
            vmem_limit_bytes=vmem_limit,
        ),
        cost_estimate=pl.CostEstimate(
            flops=int(flops), transcendentals=0,
            bytes_accessed=int(bytes_accessed)),
    )(x, w01, b01, w2, b2, w3, b3)

    return out


# -------------------------- parameter construction --------------------------
def _linear_init(key, fan_in, fan_out):
    """PyTorch nn.Linear default init: U(-1/sqrt(fan_in), 1/sqrt(fan_in))."""
    kw, kb = jax.random.split(key)
    bound = 1.0 / jnp.sqrt(fan_in)
    w = jax.random.uniform(kw, (fan_out, fan_in), jnp.float32, -bound, bound)
    b = jax.random.uniform(kb, (fan_out,), jnp.float32, -bound, bound)
    return w, b


def _spectral_norm(w):
    # nn.utils.spectral_norm divides W by its largest singular value
    # (power-iteration estimate); exact SVD used here at setup time.
    sigma = jnp.linalg.svd(w, compute_uv=False)[0]
    return w / sigma


def make_params(key, in_dim=256, latent_dim=128, end_dim=2):
    k_e, k1, k2, k3 = jax.random.split(key, 4)

    # Frozen encoder stand-in (see TODO at top of file).
    we, be = _linear_init(k_e, in_dim, latent_dim)
    w1, b1 = _linear_init(k1, latent_dim, 64)   # 1 << 6
    w2, b2 = _linear_init(k2, 64, 32)           # 1 << 5
    w3, b3 = _linear_init(k3, 32, end_dim)
    w1, w2, w3 = _spectral_norm(w1), _spectral_norm(w2), _spectral_norm(w3)

    # f32 reference params, transposed to (in, out), biases 2-D.
    ref = {
        "we": we.T, "be": be[None, :],
        "w1": w1.T, "b1": b1[None, :],
        "w2": w2.T, "b2": b2[None, :],
        "w3": w3.T, "b3": b3[None, :],
    }

    # Kernel params: fold the (purely affine) encoder into layer 1, cast matmul
    # operands to bf16 (f32 accumulation in-kernel), keep biases f32.
    w01 = ref["we"] @ ref["w1"]                 # (in_dim, 64)
    b01 = ref["be"] @ ref["w1"] + ref["b1"]     # (1, 64)

    kparams = {
        "w01": w01.astype(jnp.bfloat16), "b01": b01,
        "w2": ref["w2"].astype(jnp.bfloat16), "b2": ref["b2"],
        "w3": ref["w3"].astype(jnp.bfloat16), "b3": ref["b3"],
    }
    return kparams, ref


# ----------------------------------- main ------------------------------------
if __name__ == "__main__":
    key = jax.random.PRNGKey(0)
    k_params, k_x = jax.random.split(key)

    B, IN_DIM, LATENT, END_DIM = 40, 256, 128, 2
    kparams, ref_params = make_params(
        k_params, in_dim=IN_DIM, latent_dim=LATENT, end_dim=END_DIM)
    x = jax.random.normal(k_x, (B, IN_DIM), jnp.float32)

    # Small tile on purpose so the test exercises a multi-step grid AND the
    # ragged (masked) final tile; production callers use the default tile_b.
    out = ct_discriminator(x, kparams, tile_b=32)
    out = jax.block_until_ready(out)

    # Reference: unfused, unpadded f32 math with the original params.
    h = x @ ref_params["we"] + ref_params["be"]
    h = jnp.maximum(h @ ref_params["w1"] + ref_params["b1"], 0.0)
    h = jnp.maximum(h @ ref_params["w2"] + ref_params["b2"], 0.0)
    ref = h @ ref_params["w3"] + ref_params["b3"]

    assert out.shape == (B, END_DIM)
    # bf16 matmul operands with f32 accumulation: relaxed tolerance vs f32 ref.
    assert jnp.allclose(out, ref, atol=3e-2, rtol=3e-2)

    print("KERNEL_OK")
</pallas_src>

<mosaic_0001>
module attributes {stable_mosaic.version = 11 : i64} {
  func.func @_ct_discriminator_kernel(%arg0: i32, %arg1: memref<32x256xf32, #tpu.memory_space<vmem>>, %arg2: memref<256x64xbf16, #tpu.memory_space<vmem>>, %arg3: memref<1x64xf32, #tpu.memory_space<vmem>>, %arg4: memref<64x32xbf16, #tpu.memory_space<vmem>>, %arg5: memref<1x32xf32, #tpu.memory_space<vmem>>, %arg6: memref<32x2xbf16, #tpu.memory_space<vmem>>, %arg7: memref<1x2xf32, #tpu.memory_space<vmem>>, %arg8: memref<32x2xf32, #tpu.memory_space<vmem>>) attributes {dimension_semantics = [#tpu.dimension_semantics<parallel>], iteration_bounds = array<i64: 2>, scalar_prefetch = 0 : i64, scratch_operands = 0 : i64, tpu.core_type = #tpu.core_type<tc>, window_params = [{transform_indices = @transform_0, window_bounds = array<i64: 32, 256>}, {pipeline_mode = #tpu.pipeline_mode<synchronous>, transform_indices = @transform_1, window_bounds = array<i64: 256, 64>}, {pipeline_mode = #tpu.pipeline_mode<synchronous>, transform_indices = @transform_2, window_bounds = array<i64: 1, 64>}, {pipeline_mode = #tpu.pipeline_mode<synchronous>, transform_indices = @transform_3, window_bounds = array<i64: 64, 32>}, {pipeline_mode = #tpu.pipeline_mode<synchronous>, transform_indices = @transform_4, window_bounds = array<i64: 1, 32>}, {pipeline_mode = #tpu.pipeline_mode<synchronous>, transform_indices = @transform_5, window_bounds = array<i64: 32, 2>}, {pipeline_mode = #tpu.pipeline_mode<synchronous>, transform_indices = @transform_6, window_bounds = array<i64: 1, 2>}, {transform_indices = @transform_7, window_bounds = array<i64: 32, 2>}]} {
    %c0 = arith.constant 0 : index
    %c0_0 = arith.constant 0 : index
    %0 = vector.load %arg1[%c0, %c0_0] : memref<32x256xf32, #tpu.memory_space<vmem>>, vector<32x256xf32>
    %1 = arith.truncf %0 : vector<32x256xf32> to vector<32x256xbf16>
    %c0_1 = arith.constant 0 : index
    %c0_2 = arith.constant 0 : index
    %2 = vector.load %arg2[%c0_1, %c0_2] : memref<256x64xbf16, #tpu.memory_space<vmem>>, vector<256x64xbf16>
    %cst = arith.constant dense<0.000000e+00> : vector<32x64xf32>
    %3 = tpu.matmul %1, %2, %cst {dimension_numbers = #tpu.dot_dimension_numbers<[1], [0], [0], [1], [0, 0, 1, 1], [], []>} : vector<32x256xbf16>, vector<256x64xbf16>, vector<32x64xf32> -> vector<32x64xf32>
    %c0_3 = arith.constant 0 : index
    %c0_4 = arith.constant 0 : index
    %4 = vector.load %arg3[%c0_3, %c0_4] : memref<1x64xf32, #tpu.memory_space<vmem>>, vector<1x64xf32>
    %5 = vector.broadcast %4 : vector<1x64xf32> to vector<32x64xf32>
    %6 = arith.addf %3, %5 : vector<32x64xf32>
    %cst_5 = arith.constant 0.000000e+00 : f32
    %7 = vector.broadcast %cst_5 : f32 to vector<32x64xf32>
    %8 = arith.maximumf %6, %7 : vector<32x64xf32>
    %9 = arith.truncf %8 : vector<32x64xf32> to vector<32x64xbf16>
    %c0_6 = arith.constant 0 : index
    %c0_7 = arith.constant 0 : index
    %10 = vector.load %arg4[%c0_6, %c0_7] : memref<64x32xbf16, #tpu.memory_space<vmem>>, vector<64x32xbf16>
    %cst_8 = arith.constant dense<0.000000e+00> : vector<32x32xf32>
    %11 = tpu.matmul %9, %10, %cst_8 {dimension_numbers = #tpu.dot_dimension_numbers<[1], [0], [0], [1], [0, 0, 1, 1], [], []>} : vector<32x64xbf16>, vector<64x32xbf16>, vector<32x32xf32> -> vector<32x32xf32>
    %c0_9 = arith.constant 0 : index
    %c0_10 = arith.constant 0 : index
    %12 = vector.load %arg5[%c0_9, %c0_10] : memref<1x32xf32, #tpu.memory_space<vmem>>, vector<1x32xf32>
    %13 = vector.broadcast %12 : vector<1x32xf32> to vector<32x32xf32>
    %14 = arith.addf %11, %13 : vector<32x32xf32>
    %cst_11 = arith.constant 0.000000e+00 : f32
    %15 = vector.broadcast %cst_11 : f32 to vector<32x32xf32>
    %16 = arith.maximumf %14, %15 : vector<32x32xf32>
    %17 = arith.truncf %16 : vector<32x32xf32> to vector<32x32xbf16>
    %c0_12 = arith.constant 0 : index
    %c0_13 = arith.constant 0 : index
    %18 = vector.load %arg6[%c0_12, %c0_13] : memref<32x2xbf16, #tpu.memory_space<vmem>>, vector<32x2xbf16>
    %cst_14 = arith.constant dense<0.000000e+00> : vector<32x2xf32>
    %19 = tpu.matmul %17, %18, %cst_14 {dimension_numbers = #tpu.dot_dimension_numbers<[1], [0], [0], [1], [0, 0, 1, 1], [], []>} : vector<32x32xbf16>, vector<32x2xbf16>, vector<32x2xf32> -> vector<32x2xf32>
    %c0_15 = arith.constant 0 : index
    %c0_16 = arith.constant 0 : index
    %20 = vector.load %arg7[%c0_15, %c0_16] : memref<1x2xf32, #tpu.memory_space<vmem>>, vector<1x2xf32>
    %21 = vector.broadcast %20 : vector<1x2xf32> to vector<32x2xf32>
    %22 = arith.addf %19, %21 : vector<32x2xf32>
    %c0_17 = arith.constant 0 : index
    %c0_18 = arith.constant 0 : index
    %23 = vector.load %arg8[%c0_17, %c0_18] : memref<32x2xf32, #tpu.memory_space<vmem>>, vector<32x2xf32>
    tpu.vector_store %arg8[%c0_17, %c0_18], %22 {strides = array<i32>} : memref<32x2xf32, #tpu.memory_space<vmem>>, vector<32x2xf32>,
    return
  }
  func.func @transform_0(%arg0: i32) -> (i32, i32) {
    %c0_i32 = arith.constant 0 : i32
    %c0_i32_0 = arith.constant 0 : i32
    return %arg0, %c0_i32 : i32, i32
  }
  func.func @transform_1(%arg0: i32) -> (i32, i32) {
    %c0_i32 = arith.constant 0 : i32
    %c0_i32_0 = arith.constant 0 : i32
    %c0_i32_1 = arith.constant 0 : i32
    return %c0_i32, %c0_i32_0 : i32, i32
  }
  func.func @transform_2(%arg0: i32) -> (i32, i32) {
    %c0_i32 = arith.constant 0 : i32
    %c0_i32_0 = arith.constant 0 : i32
    %c0_i32_1 = arith.constant 0 : i32
    return %c0_i32, %c0_i32_0 : i32, i32
  }
  func.func @transform_3(%arg0: i32) -> (i32, i32) {
    %c0_i32 = arith.constant 0 : i32
    %c0_i32_0 = arith.constant 0 : i32
    %c0_i32_1 = arith.constant 0 : i32
    return %c0_i32, %c0_i32_0 : i32, i32
  }
  func.func @transform_4(%arg0: i32) -> (i32, i32) {
    %c0_i32 = arith.constant 0 : i32
    %c0_i32_0 = arith.constant 0 : i32
    %c0_i32_1 = arith.constant 0 : i32
    return %c0_i32, %c0_i32_0 : i32, i32
  }
  func.func @transform_5(%arg0: i32) -> (i32, i32) {
    %c0_i32 = arith.constant 0 : i32
    %c0_i32_0 = arith.constant 0 : i32
    %c0_i32_1 = arith.constant 0 : i32
    return %c0_i32, %c0_i32_0 : i32, i32
  }
  func.func @transform_6(%arg0: i32) -> (i32, i32) {
    %c0_i32 = arith.constant 0 : i32
    %c0_i32_0 = arith.constant 0 : i32
    %c0_i32_1 = arith.constant 0 : i32
    return %c0_i32, %c0_i32_0 : i32, i32
  }
  func.func @transform_7(%arg0: i32) -> (i32, i32) {
    %c0_i32 = arith.constant 0 : i32
    %c0_i32_0 = arith.constant 0 : i32
    return %arg0, %c0_i32 : i32, i32
  }
}

</mosaic_0001>

<bundles_post_ra>
// kernel: tpu_custom_call.1
= control target key start
LH: loop header
LB: loop body
LE: loop exit
PB: predicated region body
PF: predicated region fallthrough
CT: control target
= control target key end

     0   :  { %s1206_s24 = smov 0   ;;  %s1208_s25 = smov 0   ;;  %s1381_s0 = inlined_call_operand.vmem [shape: f32[40,256], index: 0, kind: input, shape index: {}]   ;;  %s1382_s1 = inlined_call_operand.vmem [shape: bf16[256,64], index: 1, kind: input, shape index: {}]   ;;  %s1383_s2 = inlined_call_operand.vmem [shape: f32[1,64], index: 2, kind: input, shape index: {}]   ;;  %s1384_s3 = inlined_call_operand.vmem [shape: bf16[64,32], index: 3, kind: input, shape index: {}]   ;;  %s1385_s4 = inlined_call_operand.vmem [shape: f32[1,32], index: 4, kind: input, shape index: {}]   ;;  %s1386_s5 = inlined_call_operand.vmem [shape: bf16[32,2], index: 5, kind: input, shape index: {}]   ;;  %s1387_s6 = inlined_call_operand.vmem [shape: f32[1,2], index: 6, kind: input, shape index: {}]   ;;  %s1388_s7 = inlined_call_operand.vmem [shape: f32[40,2], index: 7, kind: output, shape index: {}]  }
   0x1   :  { %s1210_s26 = smov 0  }
   0x2 LB: > { %s1219_s27 = sadd.s32 4294967295, %s1132_s26   ;;  %s1221_s28 = sadd.s32 1, %s1132_s26   ;;  %s1132_s26 = sphi %s1210_s26, %s1395_s26   ;;  %s1128_s25 = sphi %s1208_s25, %s1394_s25   ;;  %s1124_s24 = sphi %s1206_s24, %s1393_s24  }
   0x3   : > { %s173_s29 = ssub.s32 %s1132_s26, %s1221_s28  ;;  %s176_s30 = sadd.s32 1, %s1128_s25 }
   0x4   : > { %p174_p0 = scmp.eq.s32.totalorder %s173_s29, 0  ;;  %p186_p1 = scmp.ne.s32.totalorder %s1128_s25, %s1124_s24 }
   0x5   : > { %p187_p2 = scmp.eq.s32.totalorder %s1219_s27, 1  ;;  %p847_p3 = scmp.ge.s32.totalorder %s1132_s26, 1 }
   0x6   : > { %s1229_s8 = scalar_select %p174_p0, %s1128_s25, %s176_s30  }
   0x7   : > { %p1231_p4 = por %p187_p2, %p186_p1  ;;  %p249_p5 = scmp.lt.s32.totalorder %s1132_s26, 3 }
   0x9   : > { %p250_p6 = pnand %p847_p3, %p249_p5 }
   0xa   : > { %s1254_s22 = sshll.u32 (!%p250_p6), %s1219_s27, 2  ;;  %s283_s15 = sand.u32 (!%p250_p6), 1, %s1124_s24  }
   0xb   : > { %253 = sbr.rel (%p250_p6) target bundleno = 534 (0x216), region = 48  ;;  %p292_p7 = scmp.lt.s32.totalorder (!%p250_p6), %s1254_s22, 4 }
   0xc   : > { %s848_s16 = sshll.u32 (!%p250_p6), %s283_s15, 5 }
  0x10   : > { %v969_v0 = vld [vmem:[%s1382_s1 + $0x38] sm:$0xff]  ;;  %v968_v2 = vld [vmem:[%s1382_s1 + $0x30] sm:$0xff]  ;;  %v967_v4 = vld [vmem:[%s1382_s1 + $0x28] sm:$0xff]  ;;  %s293_s14 = scalar_select %p292_p7, %s1254_s22, 4  ;;  %vm533_vm0 = vcmask 523264   ;;  %vm585_vm1 = vcmask 261120  }
  0x11   : > { %v977_v1 = vld [vmem:[%s1382_s1 + $0x78] sm:$0xff]  ;;  %453 = vmatpush.bf16.msra.mxu0 %v969_v0  ;;  %v976_v3 = vld [vmem:[%s1382_s1 + $0x70] sm:$0xff]  ;;  %v975_v5 = vld [vmem:[%s1382_s1 + $0x68] sm:$0xff]  ;;  %vm611_vm2 = vcmask 15360   ;;  %s624_s24 = ssub.s32 (%p1231_p4), 5, %s1254_s22  ;;  %s984_s20 = sshll.u32 (%p1231_p4), %s1219_s27, 5 }
  0x12   : > { %472 = vmatpush.bf16.msra.mxu1 %v977_v1  ;;  %v966_v6 = vld [vmem:[%s1382_s1 + $0x20] sm:$0xff]  ;;  %v965_v8 = vld [vmem:[%s1382_s1 + $0x18] sm:$0xff]  ;;  %v964_v10 = vld [vmem:[%s1382_s1 + $0x10] sm:$0xff]  ;;  %s961_s19 = sshll.u32 %s293_s14, 4  ;;  %p625_p8 = scmp.lt.s32.totalorder (%p1231_p4), %s624_s24, 4 }
  0x13   : > { %v974_v7 = vld [vmem:[%s1382_s1 + $0x60] sm:$0xff]  ;;  %v973_v9 = vld [vmem:[%s1382_s1 + $0x58] sm:$0xff]  ;;  %v972_v11 = vld [vmem:[%s1382_s1 + $0x50] sm:$0xff]  ;;  %s296_s10 = scalar_lea.vmem %s1381_s0, %s961_s19  ;;  %s1319_s19 = scalar_lea.vmem [#allocation2], %s848_s16  }
  0x14   : > { %v963_v12 = vld [vmem:[%s1382_s1 + $0x8] sm:$0xff]  ;;  %v962_v14 = vld [vmem:[%s1382_s1] sm:$0xff]  ;;  %v311_v17 = vld [vmem:[%s296_s10 + $0x10] sm:$0xff]  ;;  %s1332_s26 = scalar_lea.vmem (%p1231_p4), %s1388_s7, %s984_s20  }
  0x15   : > { %454 = vmatpush.bf16.msra.mxu0 %v968_v2  ;;  %v971_v13 = vld [vmem:[%s1382_s1 + $0x48] sm:$0xff]  ;;  %v970_v15 = vld [vmem:[%s1382_s1 + $0x40] sm:$0xff]  ;;  %v312_v19 = vld [vmem:[%s296_s10 + $0x18] sm:$0xff] }
  0x16   : > { %473 = vmatpush.bf16.msra.mxu1 %v976_v3  ;;  %v309_v16 = vld [vmem:[%s296_s10] sm:$0xff]  ;;  %v310_v18 = vld [vmem:[%s296_s10 + $0x8] sm:$0xff]  ;;  %v315_v23 = vld [vmem:[%s296_s10 + $0x30] sm:$0xff] }
  0x17   : > { %v317_v20 = vpack.c.bf16 %v311_v17, %v309_v16  ;;  %v318_v21 = vpack.c.bf16 %v312_v19, %v310_v18  ;;  %v313_v22 = vld [vmem:[%s296_s10 + $0x20] sm:$0xff]  ;;  %v314_v24 = vld [vmem:[%s296_s10 + $0x28] sm:$0xff]  ;;  %v316_v25 = vld [vmem:[%s296_s10 + $0x38] sm:$0xff] }
  0x18   : > { %v319_v26 = vpack.c.bf16 %v315_v23, %v313_v22  ;;  %v320_v27 = vpack.c.bf16 %v316_v25, %v314_v24  ;;  %v981_v28 = vld [vmem:[%s1384_s3 + $0x18] sm:$0xff]  ;;  %v980_v29 = vld [vmem:[%s1384_s3 + $0x10] sm:$0xff]  ;;  %v979_v30 = vld [vmem:[%s1384_s3 + $0x8] sm:$0xff] }
  0x19   : > { %455 = vmatpush.bf16.msra.mxu0 %v967_v4  ;;  %544 = vmatpush.bf16.msra.mxu2 %v981_v28  ;;  %v978_v31 = vld [vmem:[%s1384_s3] sm:$0xff]  ;;  %v983_v55 = vld [vmem:[%s1386_s5 + $0x8] sm:$0xff] }
  0x1a   : > { %474 = vmatpush.bf16.msra.mxu1 %v975_v5  ;;  %v1075_v34 = vld [vmem:[%s1383_s2] ss:$0 sm:$0xff]  ;;  %598 = vmatpush.bf16.msra.mxu3 %v983_v55 }
  0x1b   : > { %v982_v56 = vld [vmem:[%s1386_s5] sm:$0xff] }
  0x1c   : > { %v1076_v58 = vld [vmem:[%s1385_s4] ss:$0 sm:$0xff] }
  0x1d   : > { %456 = vmatpush.bf16.msra.mxu0 %v966_v6  ;;  %545 = vmatpush.bf16.msra.mxu2 %v980_v29 }
  0x1e   : > { %475 = vmatpush.bf16.msra.mxu1 %v974_v7  ;;  %599 = vmatpush.bf16.msra.mxu3 %v982_v56 }
  0x21   : > { %457 = vmatpush.bf16.msra.mxu0 %v965_v8  ;;  %546 = vmatpush.bf16.msra.mxu2 %v979_v30  ;;  %v1077_v8 = vld [vmem:[%s1387_s6] ss:$0 sm:$0xff] }
  0x22   : > { %476 = vmatpush.bf16.msra.mxu1 %v973_v9 }
  0x25   : > { %458 = vmatpush.bf16.msra.mxu0 %v964_v10  ;;  %547 = vmatpush.bf16.msra.mxu2 %v978_v31 }
  0x26   : > { %477 = vmatpush.bf16.msra.mxu1 %v972_v11 }
  0x29   : > { %459 = vmatpush.bf16.msra.mxu0 %v963_v12 }
  0x2a   : > { %478 = vmatpush.bf16.msra.mxu1 %v971_v13 }
  0x2d   : > { %460 = vmatpush.bf16.msra.mxu0 %v962_v14 }
  0x2e   : > { %479 = vmatpush.bf16.msra.mxu1 %v970_v15 }
  0x30   : > { %461 = vmatmul.bf16.vlgmr.msra.gmra.mxu0 %v317_v20 }
  0x31   : > { %480 = vmatmul.bf16.vlgmr.msra.gmra.mxu1 %v318_v21 }
  0x40   : > { %466 = vmatmul.bf16.gmra.mxu0 %v319_v26 }
  0x41   : > { %485 = vmatmul.bf16.gmra.mxu1 %v320_v27 }
  0xad   : > { %v462_v32 = vpop.f32.mrf.mxu0 }
  0xae   : > { %v481_v33 = vpop.f32.mrf.mxu1  ;;  %v463_v35 = vadd.f32 %v1075_v34, %v462_v32 }
  0xb0   : > { %v482_v38 = vadd.f32 %v481_v33, %v463_v35 }
  0xb2   : > { %v491_v41 = vmax.f32 %v482_v38, 0.0 }
  0xb5   : > { %v464_v36 = vpop.f32.mrf.mxu0 }
  0xb6   : > { %v483_v37 = vpop.f32.mrf.mxu1  ;;  %v465_v39 = vadd.f32 %v1075_v34, %v464_v36 }
  0xb8   : > { %v484_v40 = vadd.f32 %v483_v37, %v465_v39 }
  0xba   : > { %v492_v42 = vmax.f32 %v484_v40, 0.0 }
  0xbc   : > { %v495_v43 = vpack.c.bf16 %v492_v42, %v491_v41 }
  0xbd   : > { %v467_v44 = vpop.f32.mrf.mxu0 }
  0xbe   : > { %v486_v45 = vpop.f32.mrf.mxu1  ;;  %932 = vmatmul.msk.bf16.vlgmr.msra.gmra.mxu2 %vm533_vm0, %v495_v43  ;;  %v468_v46 = vadd.f32 %v1075_v34, %v467_v44 }
  0xc0   : > { %v487_v48 = vadd.f32 %v486_v45, %v468_v46 }
  0xc2   : > { %v493_v52 = vmax.f32 %v487_v48, 0.0 }
  0xc5   : > { %v469_v47 = vpop.f32.mrf.mxu0 }
  0xc6   : > { %v470_v49 = vadd.f32 %v1075_v34, %v469_v47  ;;  %v488_v50 = vpop.f32.mrf.mxu1 }
  0xc8   : > { %v489_v51 = vadd.f32 %v488_v50, %v470_v49 }
  0xca   : > { %v494_v53 = vmax.f32 %v489_v51, 0.0 }
  0xcc   : > { %v496_v54 = vpack.c.bf16 %v494_v53, %v493_v52 }
  0xce   : > { %933 = vmatmul.msk.bf16.gmra.mxu2 %vm533_vm0, %v496_v54 }
 0x141   : > { %v549_v57 = vpop.f32.mrf.mxu2 }
 0x142   : > { %v550_v59 = vadd.f32 %v1076_v58, %v549_v57 }
 0x144   : > { %v559_v62 = vmax.f32 %v550_v59, 0.0 }
 0x149   : > { %v551_v60 = vpop.f32.mrf.mxu2 }
 0x14a   : > { %v552_v61 = vadd.f32 %v1076_v58, %v551_v60 }
 0x14c   : > { %v560_v63 = vmax.f32 %v552_v61, 0.0 }
 0x14e   : > { %v563_v0 = vpack.c.bf16 %v560_v63, %v559_v62 }
 0x150   : > { %942 = vmatmul.msk.bf16.vlgmr.msra.gmra.mxu3 %vm585_vm1, %v563_v0 }
 0x151   : > { %v554_v1 = vpop.f32.mrf.mxu2 }
 0x152   : > { %v555_v2 = vadd.f32 %v1076_v58, %v554_v1 }
 0x154   : > { %v561_v5 = vmax.f32 %v555_v2, 0.0 }
 0x159   : > { %v556_v3 = vpop.f32.mrf.mxu2 }
 0x15a   : > { %v557_v4 = vadd.f32 %v1076_v58, %v556_v3 }
 0x15c   : > { %v562_v6 = vmax.f32 %v557_v4, 0.0 }
 0x15e   : > { %v564_v7 = vpack.c.bf16 %v562_v6, %v561_v5 }
 0x160   : > { %943 = vmatmul.msk.bf16.gmra.mxu3 %vm585_vm1, %v564_v7 }
 0x1d3   : > { %v601_v9 = vpop.f32.mrf.mxu3 }
 0x1d4   : > { %v602_v10 = vadd.f32 %v1077_v8, %v601_v9 }
 0x1d6   : > { %612 = vst.msk [vmem:[%s1319_s19] sm:$0xff] %vm611_vm2, %v602_v10 }
 0x1db   : > { %v603_v11 = vpop.f32.mrf.mxu3 }
 0x1dc   : > { %v604_v12 = vadd.f32 %v1077_v8, %v603_v11 }
 0x1de   : > { %613 = vst.msk [vmem:[%s1319_s19 + $0x8] sm:$0xff] %vm611_vm2, %v604_v12 }
 0x1e3   : > { %v606_v13 = vpop.f32.mrf.mxu3 }
 0x1e4   : > { %v607_v14 = vadd.f32 %v1077_v8, %v606_v13 }
 0x1e6   : > { %614 = vst.msk [vmem:[%s1319_s19 + $0x10] sm:$0xff] %vm611_vm2, %v607_v14 }
 0x1ea   : > { %622 = sbr.rel (!%p1231_p4) target bundleno = 534 (0x216), region = 52 }
 0x1eb   : > { %v608_v15 = vpop.f32.mrf.mxu3 }
 0x1ec   : > { %v609_v16 = vadd.f32 %v1077_v8, %v608_v15 }
 0x1ee   : > { %615 = vst.msk [vmem:[%s1319_s19 + $0x18] sm:$0xff] %vm611_vm2, %v609_v16 }
 0x1ef   : > { %s1397_s24 = smov (!%p625_p8, %s624_s24), 4 }
 0x1f0   : > { %s946_s29 = sshll.u32 %s1397_s24, 3 }
 0x1f1   : > { %p949_p9 = scmp.eq.s32.totalorder %s946_s29, 0 }
 0x1f2   : > { %s1338_s30 = sshrl.u32 (!%p949_p9), %s1397_s24, 2 }
 0x1f3   : > { %633 = sbr.rel (%p949_p9) target bundleno = 534 (0x216), region = 56  ;;  %p950_p10 = scmp.le.s32.totalorder (!%p949_p9), %s1338_s30, 0 }
 0x1f8   : > { %800 = sbr.rel (%p950_p10) target bundleno = 517 (0x205), region = 132  ;;  %s1390_s27 = smov (!%p950_p10), %s1332_s26 }
 0x1f9   : > { %s1391_s9 = smov (!%p950_p10), %s1319_s19  ;;  %s1347_s22 = smov (!%p950_p10), 0  }
 0x1fa   : > { %s1146_s10 = smov (!%p950_p10), 0  }
 0x1fd LB: >> { %v702_v17 = vld [vmem:[%s1140_s9] sm:$0xff]  ;;  %v704_v18 = vld [vmem:[%s1140_s9 + $0x8] sm:$0xff]  ;;  %v706_v19 = vld [vmem:[%s1140_s9 + $0x10] sm:$0xff]  ;;  %s710_s11 = sadd.s32 1, %s1144_s22  ;;  %s696_s10 = sadd.s32 1, %s1148_s10   ;;  %s1148_s10 = sphi %s1146_s10, %s696_s10   ;;  %s1144_s22 = sphi %s1347_s22, %s1392_s22   ;;  %s1140_s9 = sphi %s1391_s9, %s715_s9   ;;  %s1136_s27 = sphi %s1390_s27, %s716_s27  }
 0x1fe   : >> { %703 = vst [vmem:[%s1136_s27] sm:$0xff] %v702_v17  ;;  %v708_v20 = vld [vmem:[%s1140_s9 + $0x18] sm:$0xff]  ;;  %p711_p11 = scmp.ge.s32.totalorder %s710_s11, %s1338_s30  ;;  %p695_p12 = scmp.ge.s32.totalorder %s696_s10, %s1338_s30 }
 0x1ff   : >> { %705 = vst [vmem:[%s1136_s27 + $0x8] sm:$0xff] %v704_v18 }
 0x200   : >> { %707 = vst [vmem:[%s1136_s27 + $0x10] sm:$0xff] %v706_v19  ;;  %s1399_s11 = smov (%p711_p11, %s710_s11), 0  ;;  %698 = sbr.rel (!%p695_p12) target bundleno = 509 (0x1fd), region = 138 }
 0x201   : >> { %709 = vst [vmem:[%s1136_s27 + $0x18] sm:$0xff] %v708_v20  ;;  %s951_s12 = sshll.u32 %s1399_s11, 5  ;;  %s1392_s22 = smov %s1399_s11 }
 0x202   : >> { %s715_s9 = scalar_lea.vmem %s1319_s19, %s951_s12 [#allocation2]   ;;  %s716_s27 = scalar_lea.vmem %s1332_s26, %s951_s12  }
 0x205 PF: > { %s1363_s13 = sand.u32 3, %s1397_s24   ;;  %s985_s14 = sshll.u32 %s1338_s30, 5 }
 0x206   : > { %s721_s15 = scalar_lea.vmem %s1319_s19, %s985_s14 [#allocation2]   ;;  %s723_s16 = scalar_lea.vmem %s1332_s26, %s985_s14  }
 0x207   : > { %p956_p13 = scmp.le.s32.totalorder %s1363_s13, 0 }
 0x208   : > { %s1150_s17 = smov (!%p956_p13), %s723_s16   ;;  %s1154_s18 = smov (!%p956_p13), %s721_s15  }
 0x209   : > { %814 = sbr.rel (%p956_p13) target bundleno = 534 (0x216), region = 143  ;;  %s1158_s20 = smov (!%p956_p13), 0  }
 0x20a   : > { %s1162_s21 = smov (!%p956_p13), 0  }
 0x20e LB: >> { %v733_v21 = vld [vmem:[%s1156_s18] sm:$0xff]  ;;  %s735_s24 = sadd.s32 1, %s1160_s20  ;;  %s727_s21 = sadd.s32 1, %s1164_s21   ;;  %s1164_s21 = sphi %s1162_s21, %s727_s21   ;;  %s1160_s20 = sphi %s1158_s20, %s1159_s20   ;;  %s1156_s18 = sphi %s1154_s18, %s740_s18   ;;  %s1152_s17 = sphi %s1150_s17, %s741_s17  }
 0x20f   : >> { %734 = vst [vmem:[%s1152_s17] sm:$0xff] %v733_v21  ;;  %p736_p0 = scmp.ge.s32.totalorder %s735_s24, %s1363_s13  ;;  %p726_p1 = scmp.ge.s32.totalorder %s727_s21, %s1363_s13 }
 0x211   : >> { %s1401_s24 = smov (%p736_p0, %s735_s24), 0  ;;  %729 = sbr.rel (!%p726_p1) target bundleno = 526 (0x20e), region = 149 }
 0x212   : >> { %s957_s19 = sshll.u32 %s1401_s24, 3  ;;  %s1159_s20 = smov %s1401_s24  }
 0x213   : >> { %s740_s18 = scalar_lea.vmem %s721_s15, %s957_s19 [#allocation2]   ;;  %s741_s17 = scalar_lea.vmem %s723_s16, %s957_s19  }
 0x216 PF: > { %p14_p2 = scmp.ge.s32.totalorder %s1221_s28, 4   ;;  %s1393_s24 = smov %s1128_s25 }
 0x217   : > { %s1394_s25 = smov %s1229_s8  ;;  %s1395_s26 = smov %s1221_s28 }
 0x218   :  { %16 = sbr.rel (!%p14_p2) target bundleno = 2 (0x2), region = 160 }

</bundles_post_ra>
